<compile_context>
chip_gen: v6e
topology: v6e:2x2x1
jax: 0.10.0
libtpu: 0.0.40
codegen_flags: <defaults>
</compile_context>

<pallas_src>
import functools

import jax
import jax.numpy as jnp
from jax import lax
from jax.experimental import pallas as pl
from jax.experimental.pallas import tpu as pltpu


def _round_up(x, m):
    return ((x + m - 1) // m) * m


# ----------------------------------------------------------------------------
# Pallas kernel: whole residual block fused; one grid step = `bt` batch elems.
# ----------------------------------------------------------------------------
def _temporal_block_kernel(x_ref, w1_ref, b1_ref, w2_ref, b2_ref, *rest,
                           kernel_size, dilation, pad_x, pad_h, has_downsample):
    """Refs (per grid step):
       x_ref : (bt, pad_x+L, Cin_p)   causally pre-padded, channel-padded, bf16
       w1_ref: (K*Cin_p, Cout_p)      conv1 im2col weights (weight-normed), bf16
       b1_ref: (1, Cout_p)            f32
       w2_ref: (K*Cout_p, Cout_p)     conv2 im2col weights, bf16
       b2_ref: (1, Cout_p)            f32
       [wd_ref: (Cin_p, Cout_p), bd_ref: (1, Cout_p)]   only if Cin != Cout
       o_ref : (bt, L, Cout_p)        f32
       h_ref : (bt, pad_h+L, Cout_p)  VMEM scratch (conv2 input, bf16)
    """
    if has_downsample:
        wd_ref, bd_ref, o_ref, h_ref = rest
    else:
        o_ref, h_ref = rest

    K, d = kernel_size, dilation
    bt = x_ref.shape[0]
    cin_p = x_ref.shape[-1]
    L = o_ref.shape[1]
    cout_p = o_ref.shape[-1]

    xp = x_ref[...]                                    # (bt, pad_x+L, Cin_p) bf16

    # ---- conv1: im2col over K dilated causal taps -> single MXU matmul ----
    # tap k needs x[t - (K-1-k)*d]  ==  xp[:, pad_x - (K-1-k)*d + t, :]
    xcat = jnp.concatenate(
        [xp[:, pad_x - (K - 1 - k) * d: pad_x - (K - 1 - k) * d + L, :]
         for k in range(K)], axis=-1)                  # (bt, L, K*Cin_p)
    h1 = jnp.dot(xcat.reshape(bt * L, K * cin_p), w1_ref[...],
                 preferred_element_type=jnp.float32)
    h1 = jnp.maximum(h1 + b1_ref[...], 0.0)            # bias after dot, relu1

    # Stage conv2 input in VMEM scratch with pad_h (sublane-aligned) leading
    # zero rows -> conv2 taps become plain slices, no per-tap zeros/concat.
    if pad_h > 0:
        h_ref[:, :pad_h, :] = jnp.zeros((bt, pad_h, cout_p), h_ref.dtype)
    h_ref[:, pad_h:, :] = h1.reshape(bt, L, cout_p).astype(h_ref.dtype)

    # ---- conv2: same im2col trick, single matmul ----
    hp = h_ref[...]                                    # (bt, pad_h+L, Cout_p)
    hcat = jnp.concatenate(
        [hp[:, pad_h - (K - 1 - k) * d: pad_h - (K - 1 - k) * d + L, :]
         for k in range(K)], axis=-1)                  # (bt, L, K*Cout_p)
    h2 = jnp.dot(hcat.reshape(bt * L, K * cout_p), w2_ref[...],
                 preferred_element_type=jnp.float32)
    h2 = jnp.maximum(h2 + b2_ref[...], 0.0)            # relu2

    # ---- residual path (1x1 conv if Cin != Cout, else identity) ----
    x_res = xp[:, pad_x:, :].reshape(bt * L, cin_p)    # aligned slice
    if has_downsample:
        res = jnp.dot(x_res, wd_ref[...],
                      preferred_element_type=jnp.float32) + bd_ref[...]
    else:
        res = x_res.astype(jnp.float32)

    out = jnp.maximum(h2 + res, 0.0)                   # final residual relu, f32
    o_ref[...] = out.reshape(bt, L, cout_p).astype(o_ref.dtype)


# ----------------------------------------------------------------------------
# Wrapper: weight-norm, im2col weight packing, layout/pad prep, pallas_call.
# ----------------------------------------------------------------------------
def temporal_block_forward(x_ncl, params, *, kernel_size, dilation,
                           compute_dtype=jnp.bfloat16):
    """x_ncl: (B, Cin, L) float32 (PyTorch NCL).  Returns (B, Cout, L) float32."""
    B, Cin, L = x_ncl.shape
    K = kernel_size
    pad = (K - 1) * dilation

    # weight_norm: w = g * v / ||v||  (norm over dims (1,2), per out-channel)
    def wn(v, g):
        nrm = jnp.sqrt(jnp.sum(v * v, axis=(1, 2), keepdims=True))
        return g * v / nrm

    w1 = wn(params["v1"], params["g1"])                # (Cout, Cin, K)
    w2 = wn(params["v2"], params["g2"])                # (Cout, Cout, K)
    Cout = w1.shape[0]
    has_downsample = Cin != Cout

    # ---- lane/sublane-friendly padded sizes ----
    Cin_p = _round_up(Cin, 128)                        # lane-dense channels
    Cout_p = _round_up(Cout, 128)
    Lc = _round_up(L, 8)                               # compute length (sublane)
    pad_x = _round_up(pad, 8)                          # aligned causal pre-pad
    pad_h = _round_up(pad, 8)                          # aligned scratch offset
    Lp = Lc + pad_x                                    # pre-padded input length

    # batch tile: amortize per-grid-step overhead, but keep >= 2 grid slices
    # for multi-TensorCore chips (v7x) when the batch allows it.
    bt = max(1, min(B, 512 // max(Lc, 1)))
    if B >= 2:
        bt = min(bt, (B + 1) // 2)
    B_pad = _round_up(B, bt)

    # TODO(synk): for very long sequences, additionally tile the L axis with a
    # (K-1)*dilation halo to fit v7x's 64 MiB VMEM; not needed at these sizes.

    # ---- im2col weights: (Cout, cin, K) -> (K*cin_p, Cout_p), bf16 ----
    def pack_conv_weight(w, cin, cin_p):
        wt = jnp.transpose(w, (2, 1, 0))               # (K, cin, Cout)
        wt = jnp.pad(wt, ((0, 0), (0, cin_p - cin), (0, Cout_p - Cout)))
        return wt.reshape(K * cin_p, Cout_p).astype(compute_dtype)

    w1_cat = pack_conv_weight(w1, Cin, Cin_p)
    w2_cat = pack_conv_weight(w2, Cout, Cout_p)
    b1 = jnp.pad(params["b1"], (0, Cout_p - Cout)).reshape(1, Cout_p).astype(jnp.float32)
    b2 = jnp.pad(params["b2"], (0, Cout_p - Cout)).reshape(1, Cout_p).astype(jnp.float32)

    # ---- input: NCL -> NLC, causal zero pre-pad, channel/batch pad, bf16 ----
    x_nlc = jnp.transpose(x_ncl, (0, 2, 1))            # (B, L, Cin)
    x_pad = jnp.pad(x_nlc, ((0, B_pad - B), (pad_x, Lc - L), (0, Cin_p - Cin)))
    x_pad = x_pad.astype(compute_dtype)                # (B_pad, Lp, Cin_p)

    inputs = [x_pad, w1_cat, b1, w2_cat, b2]
    in_specs = [
        pl.BlockSpec((bt, Lp, Cin_p), lambda b: (b, 0, 0)),
        pl.BlockSpec((K * Cin_p, Cout_p), lambda b: (0, 0)),
        pl.BlockSpec((1, Cout_p), lambda b: (0, 0)),
        pl.BlockSpec((K * Cout_p, Cout_p), lambda b: (0, 0)),
        pl.BlockSpec((1, Cout_p), lambda b: (0, 0)),
    ]
    if has_downsample:
        wd = jnp.transpose(params["wd"][:, :, 0], (1, 0))        # (Cin, Cout)
        wd = jnp.pad(wd, ((0, Cin_p - Cin), (0, Cout_p - Cout))).astype(compute_dtype)
        bd = jnp.pad(params["bd"], (0, Cout_p - Cout)).reshape(1, Cout_p).astype(jnp.float32)
        inputs += [wd, bd]
        in_specs += [pl.BlockSpec((Cin_p, Cout_p), lambda b: (0, 0)),
                     pl.BlockSpec((1, Cout_p), lambda b: (0, 0))]
    # (identity residual: wd/bd dropped from the call entirely)

    kernel = functools.partial(
        _temporal_block_kernel,
        kernel_size=K, dilation=dilation, pad_x=pad_x, pad_h=pad_h,
        has_downsample=has_downsample)

    out = pl.pallas_call(
        kernel,
        out_shape=jax.ShapeDtypeStruct((B_pad, Lc, Cout_p), jnp.float32),
        grid_spec=pltpu.PrefetchScalarGridSpec(
            num_scalar_prefetch=0,
            grid=(B_pad // bt,),
            in_specs=in_specs,
            out_specs=pl.BlockSpec((bt, Lc, Cout_p), lambda b: (b, 0, 0)),
            scratch_shapes=[pltpu.VMEM((bt, pad_h + Lc, Cout_p), compute_dtype)],
        ),
        compiler_params=pltpu.CompilerParams(
            dimension_semantics=("parallel",),
        ),
    )(*inputs)

    out = out[:B, :L, :Cout]                           # strip batch/L/lane pad
    return jnp.transpose(out, (0, 2, 1))               # back to (B, Cout, L)


# ----------------------------------------------------------------------------
# Pure-JAX reference (mirrors the PyTorch graph exactly, NCL layout, f32).
# ----------------------------------------------------------------------------
def temporal_block_reference(x, params, *, kernel_size, dilation, padding):
    def wn(v, g):
        nrm = jnp.sqrt(jnp.sum(v * v, axis=(1, 2), keepdims=True))
        return g * v / nrm

    def conv1d(inp, w, b, pad, dil):
        y = lax.conv_general_dilated(
            inp, w, window_strides=(1,), padding=[(pad, pad)],
            rhs_dilation=(dil,), dimension_numbers=("NCH", "OIH", "NCH"),
            precision=lax.Precision.HIGHEST)
        return y + b[None, :, None]

    def chomp(h):
        return h[:, :, :-padding] if padding > 0 else h

    w1 = wn(params["v1"], params["g1"])
    w2 = wn(params["v2"], params["g2"])

    h = conv1d(x, w1, params["b1"], padding, dilation)
    h = jax.nn.relu(chomp(h))                          # chomp1 + relu1
    h = conv1d(h, w2, params["b2"], padding, dilation)
    h = jax.nn.relu(chomp(h))                          # chomp2 + relu2

    if x.shape[1] != w1.shape[0]:
        res = conv1d(x, params["wd"], params["bd"], 0, 1)   # 1x1 downsample
    else:
        res = x
    return jax.nn.relu(h + res)


# ----------------------------------------------------------------------------
if __name__ == "__main__":
    # Module hyper-params (small, consistent with a TCN layer)
    B, Cin, Cout, L = 2, 4, 8, 16
    K, stride, dilation = 3, 1, 2
    padding = (K - 1) * dilation
    # TODO(synk): stride != 1 not supported (PyTorch chomp/residual only makes
    # sense for stride=1 anyway).
    assert stride == 1

    key = jax.random.PRNGKey(0)
    ks = jax.random.split(key, 8)

    # Deterministic parameter init (weight_norm parametrization: v and g).
    v1 = jax.random.normal(ks[0], (Cout, Cin, K), jnp.float32) * 0.3
    v2 = jax.random.normal(ks[1], (Cout, Cout, K), jnp.float32) * 0.3
    params = {
        "v1": v1,
        "g1": jnp.sqrt(jnp.sum(v1 * v1, axis=(1, 2), keepdims=True)),  # g = ||v||
        "b1": jax.random.normal(ks[2], (Cout,), jnp.float32) * 0.1,
        "v2": v2,
        "g2": jnp.sqrt(jnp.sum(v2 * v2, axis=(1, 2), keepdims=True)),
        "b2": jax.random.normal(ks[3], (Cout,), jnp.float32) * 0.1,
        "wd": jax.random.normal(ks[4], (Cout, Cin, 1), jnp.float32) * 0.3,
        "bd": jax.random.normal(ks[5], (Cout,), jnp.float32) * 0.1,
    }

    x = jax.random.normal(ks[6], (B, Cin, L), jnp.float32)

    out = temporal_block_forward(x, params, kernel_size=K, dilation=dilation)
    out = jax.block_until_ready(out)

    ref = temporal_block_reference(x, params, kernel_size=K,
                                   dilation=dilation, padding=padding)
    ref = jax.block_until_ready(ref)

    assert out.shape == (B, Cout, L), out.shape
    # bf16 MXU operands (f32 accumulation) vs f32 HIGHEST-precision reference:
    # loosened tolerance accordingly.
    max_err = float(jnp.max(jnp.abs(out - ref)))
    assert max_err < 5e-2, max_err

    print("KERNEL_OK")
</pallas_src>

<mosaic_0001>
module attributes {stable_mosaic.version = 11 : i64} {
  func.func @_temporal_block_kernel(%arg0: i32, %arg1: memref<1x24x128xbf16, #tpu.memory_space<vmem>>, %arg2: memref<384x128xbf16, #tpu.memory_space<vmem>>, %arg3: memref<1x128xf32, #tpu.memory_space<vmem>>, %arg4: memref<384x128xbf16, #tpu.memory_space<vmem>>, %arg5: memref<1x128xf32, #tpu.memory_space<vmem>>, %arg6: memref<128x128xbf16, #tpu.memory_space<vmem>>, %arg7: memref<1x128xf32, #tpu.memory_space<vmem>>, %arg8: memref<1x16x128xf32, #tpu.memory_space<vmem>>, %arg9: memref<1x24x128xbf16, #tpu.memory_space<vmem>>) attributes {dimension_semantics = [#tpu.dimension_semantics<parallel>], iteration_bounds = array<i64: 2>, scalar_prefetch = 0 : i64, scratch_operands = 1 : i64, tpu.core_type = #tpu.core_type<tc>, window_params = [{transform_indices = @transform_0, window_bounds = array<i64: 1, 24, 128>}, {pipeline_mode = #tpu.pipeline_mode<synchronous>, transform_indices = @transform_1, window_bounds = array<i64: 384, 128>}, {pipeline_mode = #tpu.pipeline_mode<synchronous>, transform_indices = @transform_2, window_bounds = array<i64: 1, 128>}, {pipeline_mode = #tpu.pipeline_mode<synchronous>, transform_indices = @transform_3, window_bounds = array<i64: 384, 128>}, {pipeline_mode = #tpu.pipeline_mode<synchronous>, transform_indices = @transform_4, window_bounds = array<i64: 1, 128>}, {pipeline_mode = #tpu.pipeline_mode<synchronous>, transform_indices = @transform_5, window_bounds = array<i64: 128, 128>}, {pipeline_mode = #tpu.pipeline_mode<synchronous>, transform_indices = @transform_6, window_bounds = array<i64: 1, 128>}, {transform_indices = @transform_7, window_bounds = array<i64: 1, 16, 128>}]} {
    %c0 = arith.constant 0 : index
    %c0_0 = arith.constant 0 : index
    %c0_1 = arith.constant 0 : index
    %0 = vector.load %arg1[%c0, %c0_0, %c0_1] : memref<1x24x128xbf16, #tpu.memory_space<vmem>>, vector<1x24x128xbf16>
    %1 = vector.extract_strided_slice %0 {offsets = [0, 4, 0], sizes = [1, 16, 128], strides = [1, 1, 1]} : vector<1x24x128xbf16> to vector<1x16x128xbf16>
    %2 = vector.extract_strided_slice %0 {offsets = [0, 6, 0], sizes = [1, 16, 128], strides = [1, 1, 1]} : vector<1x24x128xbf16> to vector<1x16x128xbf16>
    %3 = vector.extract_strided_slice %0 {offsets = [0, 8, 0], sizes = [1, 16, 128], strides = [1, 1, 1]} : vector<1x24x128xbf16> to vector<1x16x128xbf16>
    %4 = tpu.concatenate %1, %2, %3 in 2 : vector<1x16x128xbf16>, vector<1x16x128xbf16>, vector<1x16x128xbf16> -> vector<1x16x384xbf16>
    %5 = vector.shape_cast %4 : vector<1x16x384xbf16> to vector<16x384xbf16>
    %c0_2 = arith.constant 0 : index
    %c0_3 = arith.constant 0 : index
    %6 = vector.load %arg2[%c0_2, %c0_3] : memref<384x128xbf16, #tpu.memory_space<vmem>>, vector<384x128xbf16>
    %cst = arith.constant dense<0.000000e+00> : vector<16x128xf32>
    %7 = tpu.matmul %5, %6, %cst {dimension_numbers = #tpu.dot_dimension_numbers<[1], [0], [0], [1], [0, 0, 1, 1], [], []>} : vector<16x384xbf16>, vector<384x128xbf16>, vector<16x128xf32> -> vector<16x128xf32>
    %c0_4 = arith.constant 0 : index
    %c0_5 = arith.constant 0 : index
    %8 = vector.load %arg3[%c0_4, %c0_5] : memref<1x128xf32, #tpu.memory_space<vmem>>, vector<1x128xf32>
    %9 = vector.broadcast %8 : vector<1x128xf32> to vector<16x128xf32>
    %10 = arith.addf %7, %9 : vector<16x128xf32>
    %cst_6 = arith.constant 0.000000e+00 : f32
    %11 = vector.broadcast %cst_6 : f32 to vector<16x128xf32>
    %12 = arith.maximumf %10, %11 : vector<16x128xf32>
    %cst_7 = arith.constant 0.000000e+00 : bf16
    %13 = vector.broadcast %cst_7 : bf16 to vector<1x8x128xbf16>
    %c0_8 = arith.constant 0 : index
    %c0_9 = arith.constant 0 : index
    %c0_10 = arith.constant 0 : index
    %14 = vector.load %arg9[%c0_8, %c0_9, %c0_10] : memref<1x24x128xbf16, #tpu.memory_space<vmem>>, vector<1x8x128xbf16>
    tpu.vector_store %arg9[%c0_8, %c0_9, %c0_10], %13 {strides = array<i32>} : memref<1x24x128xbf16, #tpu.memory_space<vmem>>, vector<1x8x128xbf16>,
    %15 = vector.shape_cast %12 : vector<16x128xf32> to vector<1x16x128xf32>
    %16 = arith.truncf %15 : vector<1x16x128xf32> to vector<1x16x128xbf16>
    %c0_11 = arith.constant 0 : index
    %c8 = arith.constant 8 : index
    %c0_12 = arith.constant 0 : index
    %17 = vector.load %arg9[%c0_11, %c8, %c0_12] : memref<1x24x128xbf16, #tpu.memory_space<vmem>>, vector<1x16x128xbf16>
    tpu.vector_store %arg9[%c0_11, %c8, %c0_12], %16 {strides = array<i32>} : memref<1x24x128xbf16, #tpu.memory_space<vmem>>, vector<1x16x128xbf16>,
    %c0_13 = arith.constant 0 : index
    %c0_14 = arith.constant 0 : index
    %c0_15 = arith.constant 0 : index
    %18 = vector.load %arg9[%c0_13, %c0_14, %c0_15] : memref<1x24x128xbf16, #tpu.memory_space<vmem>>, vector<1x24x128xbf16>
    %19 = vector.extract_strided_slice %18 {offsets = [0, 4, 0], sizes = [1, 16, 128], strides = [1, 1, 1]} : vector<1x24x128xbf16> to vector<1x16x128xbf16>
    %20 = vector.extract_strided_slice %18 {offsets = [0, 6, 0], sizes = [1, 16, 128], strides = [1, 1, 1]} : vector<1x24x128xbf16> to vector<1x16x128xbf16>
    %21 = vector.extract_strided_slice %18 {offsets = [0, 8, 0], sizes = [1, 16, 128], strides = [1, 1, 1]} : vector<1x24x128xbf16> to vector<1x16x128xbf16>
    %22 = tpu.concatenate %19, %20, %21 in 2 : vector<1x16x128xbf16>, vector<1x16x128xbf16>, vector<1x16x128xbf16> -> vector<1x16x384xbf16>
    %23 = vector.shape_cast %22 : vector<1x16x384xbf16> to vector<16x384xbf16>
    %c0_16 = arith.constant 0 : index
    %c0_17 = arith.constant 0 : index
    %24 = vector.load %arg4[%c0_16, %c0_17] : memref<384x128xbf16, #tpu.memory_space<vmem>>, vector<384x128xbf16>
    %cst_18 = arith.constant dense<0.000000e+00> : vector<16x128xf32>
    %25 = tpu.matmul %23, %24, %cst_18 {dimension_numbers = #tpu.dot_dimension_numbers<[1], [0], [0], [1], [0, 0, 1, 1], [], []>} : vector<16x384xbf16>, vector<384x128xbf16>, vector<16x128xf32> -> vector<16x128xf32>
    %c0_19 = arith.constant 0 : index
    %c0_20 = arith.constant 0 : index
    %26 = vector.load %arg5[%c0_19, %c0_20] : memref<1x128xf32, #tpu.memory_space<vmem>>, vector<1x128xf32>
    %27 = vector.broadcast %26 : vector<1x128xf32> to vector<16x128xf32>
    %28 = arith.addf %25, %27 : vector<16x128xf32>
    %cst_21 = arith.constant 0.000000e+00 : f32
    %29 = vector.broadcast %cst_21 : f32 to vector<16x128xf32>
    %30 = arith.maximumf %28, %29 : vector<16x128xf32>
    %31 = vector.extract_strided_slice %0 {offsets = [0, 8, 0], sizes = [1, 16, 128], strides = [1, 1, 1]} : vector<1x24x128xbf16> to vector<1x16x128xbf16>
    %32 = vector.shape_cast %31 : vector<1x16x128xbf16> to vector<16x128xbf16>
    %c0_22 = arith.constant 0 : index
    %c0_23 = arith.constant 0 : index
    %33 = vector.load %arg6[%c0_22, %c0_23] : memref<128x128xbf16, #tpu.memory_space<vmem>>, vector<128x128xbf16>
    %cst_24 = arith.constant dense<0.000000e+00> : vector<16x128xf32>
    %34 = tpu.matmul %32, %33, %cst_24 {dimension_numbers = #tpu.dot_dimension_numbers<[1], [0], [0], [1], [0, 0, 1, 1], [], []>} : vector<16x128xbf16>, vector<128x128xbf16>, vector<16x128xf32> -> vector<16x128xf32>
    %c0_25 = arith.constant 0 : index
    %c0_26 = arith.constant 0 : index
    %35 = vector.load %arg7[%c0_25, %c0_26] : memref<1x128xf32, #tpu.memory_space<vmem>>, vector<1x128xf32>
    %36 = vector.broadcast %35 : vector<1x128xf32> to vector<16x128xf32>
    %37 = arith.addf %34, %36 : vector<16x128xf32>
    %38 = arith.addf %30, %37 : vector<16x128xf32>
    %cst_27 = arith.constant 0.000000e+00 : f32
    %39 = vector.broadcast %cst_27 : f32 to vector<16x128xf32>
    %40 = arith.maximumf %38, %39 : vector<16x128xf32>
    %41 = vector.shape_cast %40 : vector<16x128xf32> to vector<1x16x128xf32>
    %c0_28 = arith.constant 0 : index
    %c0_29 = arith.constant 0 : index
    %c0_30 = arith.constant 0 : index
    %42 = vector.load %arg8[%c0_28, %c0_29, %c0_30] : memref<1x16x128xf32, #tpu.memory_space<vmem>>, vector<1x16x128xf32>
    tpu.vector_store %arg8[%c0_28, %c0_29, %c0_30], %41 {strides = array<i32>} : memref<1x16x128xf32, #tpu.memory_space<vmem>>, vector<1x16x128xf32>,
    return
  }
  func.func @transform_0(%arg0: i32) -> (i32, i32, i32) {
    %c0_i32 = arith.constant 0 : i32
    %c0_i32_0 = arith.constant 0 : i32
    %c0_i32_1 = arith.constant 0 : i32
    return %arg0, %c0_i32, %c0_i32_0 : i32, i32, i32
  }
  func.func @transform_1(%arg0: i32) -> (i32, i32) {
    %c0_i32 = arith.constant 0 : i32
    %c0_i32_0 = arith.constant 0 : i32
    %c0_i32_1 = arith.constant 0 : i32
    return %c0_i32, %c0_i32_0 : i32, i32
  }
  func.func @transform_2(%arg0: i32) -> (i32, i32) {
    %c0_i32 = arith.constant 0 : i32
    %c0_i32_0 = arith.constant 0 : i32
    %c0_i32_1 = arith.constant 0 : i32
    return %c0_i32, %c0_i32_0 : i32, i32
  }
  func.func @transform_3(%arg0: i32) -> (i32, i32) {
    %c0_i32 = arith.constant 0 : i32
    %c0_i32_0 = arith.constant 0 : i32
    %c0_i32_1 = arith.constant 0 : i32
    return %c0_i32, %c0_i32_0 : i32, i32
  }
  func.func @transform_4(%arg0: i32) -> (i32, i32) {
    %c0_i32 = arith.constant 0 : i32
    %c0_i32_0 = arith.constant 0 : i32
    %c0_i32_1 = arith.constant 0 : i32
    return %c0_i32, %c0_i32_0 : i32, i32
  }
  func.func @transform_5(%arg0: i32) -> (i32, i32) {
    %c0_i32 = arith.constant 0 : i32
    %c0_i32_0 = arith.constant 0 : i32
    %c0_i32_1 = arith.constant 0 : i32
    return %c0_i32, %c0_i32_0 : i32, i32
  }
  func.func @transform_6(%arg0: i32) -> (i32, i32) {
    %c0_i32 = arith.constant 0 : i32
    %c0_i32_0 = arith.constant 0 : i32
    %c0_i32_1 = arith.constant 0 : i32
    return %c0_i32, %c0_i32_0 : i32, i32
  }
  func.func @transform_7(%arg0: i32) -> (i32, i32, i32) {
    %c0_i32 = arith.constant 0 : i32
    %c0_i32_0 = arith.constant 0 : i32
    %c0_i32_1 = arith.constant 0 : i32
    return %arg0, %c0_i32, %c0_i32_0 : i32, i32, i32
  }
}

</mosaic_0001>

<bundles_post_ra>
// kernel: tpu_custom_call.1
= control target key start
LH: loop header
LB: loop body
LE: loop exit
PB: predicated region body
PF: predicated region fallthrough
CT: control target
= control target key end

     0   :  { %s2078_s0 = inlined_call_operand.hbm [shape: bf16[2,24,128], index: 0, kind: input, shape index: {}]   ;;  %s2079_s1 = inlined_call_operand.hbm [shape: bf16[384,128], index: 1, kind: input, shape index: {}]   ;;  %s2080_s2 = inlined_call_operand.vmem [shape: f32[1,128], index: 2, kind: input, shape index: {}]   ;;  %s2081_s3 = inlined_call_operand.hbm [shape: bf16[384,128], index: 3, kind: input, shape index: {}]   ;;  %s2082_s4 = inlined_call_operand.vmem [shape: f32[1,128], index: 4, kind: input, shape index: {}]   ;;  %s2083_s5 = inlined_call_operand.hbm [shape: bf16[128,128], index: 5, kind: input, shape index: {}]   ;;  %s2084_s6 = inlined_call_operand.vmem [shape: f32[1,128], index: 6, kind: input, shape index: {}]   ;;  %s2085_s7 = inlined_call_operand.hbm [shape: f32[2,16,128], index: 7, kind: output, shape index: {}]  }
   0x1   :  { %2092 = sst [smem:[#allocation16_spill]] %s2079_s1 }
   0x2   :  { %12 = vsyncpa [#allocation4], 0 }
   0x3   :  { %14 = vsyncpa [#allocation4 + $0x1], 0 }
   0x4   :  { %15 = vsyncpa [#allocation7], 0 }
   0x5   :  { %16 = vsyncpa [#allocation10], 0 }
   0x6   :  { %17 = vsyncpa [#allocation5], 0 }
   0x7   :  { %19 = vsyncpa [#allocation5 + $0x1], 0  ;;  %s1811_s24 = smov 0   ;;  %s1813_s25 = smov 0  }
   0x8   :  { %s1815_s26 = smov 0   ;;  %s1817_s27 = smov 0  }
   0x9 LB: > { %s1832_s28 = sadd.s32 4294967295, %s1757_s27   ;;  %s1210_s29 = sadd.s32 4294967294, %s1757_s27   ;;  %s1757_s27 = sphi %s1817_s27, %s2114_s27   ;;  %s1753_s26 = sphi %s1815_s26, %s2113_s26   ;;  %s1749_s25 = sphi %s1813_s25, %s2112_s25   ;;  %s1745_s24 = sphi %s1811_s24, %s2111_s24  }
   0xa   : > { %p45_p0 = scmp.ne.s32.totalorder %s1749_s25, %s1745_s24  ;;  %p2086_p1 = scmp.eq.s32.totalorder %s1832_s28, 0 }
   0xb   : > { %p195_p2 = scmp.eq.s32.totalorder %s1832_s28, 1  ;;  %p201_p3 = scmp.eq.s32.totalorder %s1210_s29, 1 }
   0xc   : > { %p1841_p4 = por %p2086_p1, %p45_p0  ;;  %p1211_p5 = scmp.ge.s32.totalorder %s1757_s27, 1 }
   0xd   : > { %p1846_p6 = por %p201_p3, %p45_p0  ;;  %p208_p7 = scmp.lt.s32.totalorder %s1757_s27, 3 }
   0xe   : > { %s2093_s30 = scalar_select %p1841_p4, 1, 0 }
   0xf   : > { %s2094_s8 = scalar_select %p1846_p6, 1, 0 }
  0x10   : > { %p1851_p8 = pnand %p1211_p5, %p208_p7  ;;  %s1759_s10 = smov [#allocation6]  }
  0x11   : > { %s220_s11 = sshll.u32 %s1759_s10, 4  ;;  %s1760_s13 = smov [#allocation8]   ;;  %s221_s11 = int_to_ptr.vmem [resolvable:$true] %s220_s11 }
  0x12   : > { %s2095_s9 = scalar_select %p1851_p8, 1, 0 }
  0x13   : > { %p1449_p9 = pneg %p1851_p8  ;;  %s236_s14 = sshll.u32 %s1760_s13, 4  ;;  %s237_s14 = int_to_ptr.vmem [resolvable:$true] %s236_s14 }
  0x14   : > { %s1761_s15 = smov [#allocation9]   ;;  %s1590_s17 = scalar_lea.vmem %s221_s11, 3072 }
  0x15   : > { %p1860_p11 = pnand %p1449_p9, %p2086_p1  ;;  %s252_s16 = sshll.u32 %s1761_s15, 4  ;;  %s253_s16 = int_to_ptr.vmem [resolvable:$true] %s252_s16 }
  0x16   : > { %p1591_p13 = scmp.ne.s32.totalorder %s221_s11, %s1590_s17  ;;  %p1598_p5 = scmp.lt.s32.totalorder %s221_s11, %s221_s11 }
  0x17   : > { %p1581_p12 = pneg %p1860_p11  ;;  %p1599_p7 = scmp.lt.s32.totalorder %s1590_s17, %s1590_s17 }
  0x19   : > { %p1593_p0 = pnand %p1591_p13, %p1581_p12  ;;  %p1600_p9 = por %p1599_p7, %p1598_p5 }
  0x1b   : > { %p1594_p3 = pneg %p1593_p0 }
  0x1d   : > { %p1601_p10 = pnand %p1600_p9, %p1594_p3 }
  0x1f   : > { %1604 = shalt.err (!%p1601_p10)
}
  0x20   : > { %s2087_s18 = smov 64   ;;  %s2088_s19 = smov 4  }
  0x21   : > { %s2097_s1 = sld [smem:[#allocation16_spill]]  ;;  %s1616_s22 = scalar_lea.vmem %s237_s14, 3072 }
  0x22   : > { %p1617_p13 = scmp.ne.s32.totalorder %s237_s14, %s1616_s22  ;;  %p1624_p3 = scmp.lt.s32.totalorder %s237_s14, %s237_s14 }
  0x23   : > { %p1625_p10 = scmp.lt.s32.totalorder %s1616_s22, %s1616_s22 }
  0x24   : > { %p1619_p0 = pnand %p1617_p13, %p1581_p12 }
  0x25   : > { %p1626_p7 = por %p1625_p10, %p1624_p3 }
  0x26   : > { %p1620_p5 = pneg %p1619_p0 }
  0x27   : > { %1452 = dma.hbm_to_vmem [thread:$0]  (!%p1860_p11), %s2097_s1, 3072, %s221_s11, [#allocation7], %s2087_s18, %s2087_s18, %s2088_s19  }
  0x28   : > { %p1627_p9 = pnand %p1626_p7, %p1620_p5 }
  0x2a   : > { %1630 = shalt.err (!%p1627_p9)
}
  0x2b   : > { %1455 = dma.hbm_to_vmem [thread:$0]  (!%p1860_p11), %s2081_s3, 3072, %s237_s14, [#allocation7], %s2087_s18, %s2087_s18, %s2088_s19  }
  0x2c   : > { %s1642_s10 = scalar_lea.vmem %s253_s16, 1024  ;;  %p1650_p3 = scmp.lt.s32.totalorder %s253_s16, %s253_s16 }
  0x2d   : > { %p1643_p1 = scmp.ne.s32.totalorder %s253_s16, %s1642_s10  ;;  %p1651_p5 = scmp.lt.s32.totalorder %s1642_s10, %s1642_s10 }
  0x2f   : > { %p1645_p13 = pnand %p1643_p1, %p1581_p12  ;;  %p1652_p10 = por %p1651_p5, %p1650_p3 }
  0x31   : > { %p1646_p0 = pneg %p1645_p13 }
  0x33   : > { %p1653_p7 = pnand %p1652_p10, %p1646_p0 }
  0x35   : > { %1656 = shalt.err (!%p1653_p7)
}
  0x36   : > { %1458 = dma.hbm_to_vmem [thread:$0]  (!%p1860_p11), %s2083_s5, 1024, %s253_s16, [#allocation10], %s2087_s18, %s2087_s18, %s2088_s19  }
  0x37   : > { %s1900_s14 = sadd.s32 1, %s1757_s27   ;;  %s32_s15 = sadd.s32 1, %s1753_s26 }
  0x38   : > { %s29_s12 = ssub.s32 %s1757_s27, %s1900_s14  ;;  %p39_p12 = scmp.ne.s32.totalorder %s1753_s26, %s1749_s25 }
  0x39   : > { %p30_p1 = scmp.eq.s32.totalorder %s29_s12, 0  ;;  %p40_p9 = scmp.eq.s32.totalorder %s1757_s27, 0 }
  0x3a   : > { %p1470_p13 = scmp.lt.s32.totalorder %s1757_s27, 2  ;;  %p1914_p3 = por %p195_p2, %p39_p12 }
  0x3b   : > { %s1910_s17 = scalar_select %p30_p1, %s1753_s26, %s32_s15  }
  0x3c   : > { %p41_p0 = por %p40_p9, %p39_p12  ;;  %s269_s21 = sand.u32 1, %s1753_s26  }
  0x3d   : > { %s2098_s20 = scalar_select %p1914_p3, 1, 0 }
  0x3e   : > { %s1431_s22 = smul.u32 192, %s1757_s27  ;;  %p1920_p11 = pnand %p1470_p13, %p41_p0 }
  0x3f   : > { %s1430_s16 = smul.u32 12, %s269_s21  ;;  %s1931_s15 = scalar_lea.sflag [#allocation4], %s269_s21 }
  0x40   : > { %s1927_s11 = scalar_lea.hbm %s2078_s0, %s1431_s22  ;;  %p1659_p5 = pneg %p1920_p11 }
  0x41   : > { %s273_s13 = scalar_lea.vmem [#allocation3], %s1430_s16  ;;  %s1657_s18 = scalar_lea.hbm %s1927_s11, 192 }
  0x42   : > { %s280_s12 = sshll.u32 %s273_s13, 4  ;;  %p1658_p2 = scmp.ne.s32.totalorder %s1927_s11, %s1657_s18  ;;  %s1929_s12 = int_to_ptr.vmem [resolvable:$true] %s280_s12 }
  0x43   : > { %s1662_s22 = scalar_lea.hbm %s2078_s0, 384  ;;  %p1663_p1 = scmp.lt.s32.totalorder %s1927_s11, %s2078_s0 }
  0x44   : > { %p1660_p10 = pnand %p1659_p5, %p1658_p2  ;;  %p1664_p12 = scmp.lt.s32.totalorder %s1662_s22, %s1657_s18 }
  0x46   : > { %p1661_p7 = pneg %p1660_p10  ;;  %p1665_p9 = por %p1664_p12, %p1663_p1 }
  0x48   : > { %p1666_p13 = pnand %p1665_p9, %p1661_p7 }
  0x4a   : > { %1669 = shalt.err (!%p1666_p13)
}
  0x4b   : > { %s1670_s21 = scalar_lea.vmem %s1929_s12, 192  ;;  %s1764_s16 = smov [#allocation3]  }
  0x4c   : > { %p1671_p0 = scmp.ne.s32.totalorder %s1929_s12, %s1670_s21  ;;  %s1675_s13 = sshll.u32 %s1764_s16, 4  ;;  %s1676_s13 = int_to_ptr.vmem [resolvable:$false] %s1675_s13 }
  0x4d   : > { %s1677_s19 = scalar_lea.vmem %s1676_s13, 384  ;;  %p1678_p10 = scmp.lt.s32.totalorder %s1929_s12, %s1676_s13 }
  0x4e   : > { %p1673_p6 = pnand %p1671_p0, %p1659_p5  ;;  %p1679_p3 = scmp.lt.s32.totalorder %s1677_s19, %s1670_s21 }
  0x50   : > { %p1674_p2 = pneg %p1673_p6  ;;  %p1680_p4 = por %p1679_p3, %p1678_p10 }
  0x52   : > { %p1681_p8 = pnand %p1680_p4, %p1674_p2 }
  0x54   : > { %1684 = shalt.err (!%p1681_p8)
}
  0x55   : > { %s2100_s1 = smov 4   ;;  %s2101_s18 = smov 64  }
  0x56   : > { %1462 = dma.hbm_to_vmem [thread:$0]  (!%p1920_p11), %s1927_s11, 192, %s1929_s12, %s1931_s15, %s2101_s18, %s2101_s18, %s2100_s1  }
  0x57   : > { %p2102_p6 = scmp.ne.s32.totalorder %s2095_s9, 0 }
  0x58   : > { %s1958_s29 = sand.u32 (!%p2102_p6), 1, %s1749_s25   ;;  %p2103_p4 = scmp.ne.s32.totalorder (!%p2102_p6), %s2093_s30, 0 }
  0x59   : > { %292 = sbr.rel (%p2102_p6) target bundleno = 611 (0x263), region = 48  ;;  %s295_s10 = scalar_lea.sflag (!%p2102_p6), [#allocation4], %s1958_s29 }
  0x5a   : > { %s1432_s22 = smul.u32 (!%p2102_p6), 12, %s1958_s29 }
  0x5c   : > { %s1962_s21 = scalar_lea.vmem (!%p2102_p6), [#allocation3], %s1432_s22 }
  0x5e   : > { %1728 = dma.done.wait (%p2103_p4), %s295_s10, 192  }
  0x5f   : > { %1730 = vsyncadd (%p2103_p4), %s295_s10, 4294967104  ;;  %p2104_p8 = scmp.eq.s32.totalorder %s1832_s28, 0 }
  0x61   : > { %1732 = dma.done.wait (%p2104_p8), [#allocation7], 6144   ;;  %p2105_p3 = pmov %p2104_p8 }
  0x63   : > { %1734 = vsyncadd (%p2105_p3), [#allocation7], 4294961152  ;;  %p2106_p11 = pmov %p2105_p3 }
  0x64   : > { %p2107_p5 = pmov %p2105_p3 }
  0x65   : > { %1736 = dma.done.wait (%p2106_p11), [#allocation10], 1024  }
  0x66   : > { %1738 = vsyncadd (%p2107_p5), [#allocation10], 4294966272  ;;  %v1765_v0 = vmov 0.0   ;;  %vm1766_vm0 = vmmov 0   ;;  %v1517_v1 = vld [vmem:[#allocation6 + $0x78] sm:$0xff]   ;;  %v1520_v4 = vld [vmem:[#allocation6 + $0x70] sm:$0xff]  }
  0x67   : > { %1370 = vmatprep.subr.bf16.mxu1 %v1765_v0  ;;  %1386 = vmatprep.mubr.msk.bf16.mxu1 %vm1766_vm0, %v1765_v0  ;;  %v1518_v2 = vld [vmem:[#allocation6 + $0x38] sm:$0xff]   ;;  %v1521_v5 = vld [vmem:[#allocation6 + $0x30] sm:$0xff]   ;;  %v1523_v7 = vld [vmem:[#allocation6 + $0x68] sm:$0xff]   ;;  %vm353_vm1 = vcmask 1046528   ;;  %vm414_vm2 = vcmask 1045504   ;;  %v1767_v53 = vmov 0  }
  0x68   : > { %1299 = vmatprep.subr.bf16.mxu0 %v1517_v1  ;;  %v1519_v3 = vld [vmem:[#allocation6 + $0xb8] sm:$0xff]   ;;  %v1522_v6 = vld [vmem:[#allocation6 + $0xb0] sm:$0xff]   ;;  %v1524_v8 = vld [vmem:[#allocation6 + $0x28] sm:$0xff]   ;;  %654 = vst [vmem:[#allocation2] sm:$0xf] %v1767_v53  ;;  %s1221_s16 = sshll.u32 %s1958_s29, 4 }
  0x69   : > { %1300 = vmatpush3.bf16.msra.mxu0 %v1518_v2  ;;  %1371 = vmatpush3.bf16.msra.mxu1 %v1519_v3  ;;  %v1525_v9 = vld [vmem:[#allocation6 + $0xa8] sm:$0xff]   ;;  %v1526_v10 = vld [vmem:[#allocation6 + $0x60] sm:$0xff]   ;;  %v1529_v13 = vld [vmem:[#allocation6 + $0x58] sm:$0xff]   ;;  %s340_s13 = scalar_lea.vmem [#allocation11], %s1221_s16  ;;  %s1298_s1 = sshll.u32 %s1832_s28, 8 }
  0x6a   : > { %1301 = vmatprep.subr.bf16.mxu0 %v1520_v4  ;;  %1372 = vmatprep.subr.bf16.mxu1 %v1765_v0  ;;  %v1527_v11 = vld [vmem:[#allocation6 + $0x20] sm:$0xff]   ;;  %v1530_v14 = vld [vmem:[#allocation6 + $0x18] sm:$0xff]   ;;  %v1532_v16 = vld [vmem:[#allocation6 + $0x50] sm:$0xff]   ;;  %s1108_s19 = sshll.u32 %s340_s13, 4  ;;  %s2035_s10 = scalar_lea.hbm %s2085_s7, %s1298_s1  ;;  %s2030_s19 = int_to_ptr.vmem [resolvable:$true] %s1108_s19 }
  0x6b   : > { %v1528_v12 = vld [vmem:[#allocation6 + $0xa0] sm:$0xff]   ;;  %v1531_v15 = vld [vmem:[#allocation6 + $0x98] sm:$0xff]   ;;  %v1533_v17 = vld [vmem:[#allocation6 + $0x10] sm:$0xff]   ;;  %s1685_s30 = scalar_lea.vmem %s2030_s19, 256  ;;  %p2108_p1 = scmp.ne.s32.totalorder %s2098_s20, 0 }
  0x6c   : > { %v1534_v18 = vld [vmem:[#allocation6 + $0x90] sm:$0xff]   ;;  %v1535_v19 = vld [vmem:[#allocation6 + $0x48] sm:$0xff]   ;;  %v1538_v22 = vld [vmem:[#allocation6 + $0x40] sm:$0xff]   ;;  %p1686_p7 = scmp.ne.s32.totalorder %s2030_s19, %s1685_s30  ;;  %s1768_s28 = smov [#allocation11]  }
  0x6d   : > { %1302 = vmatpush3.bf16.msra.mxu0 %v1521_v5  ;;  %1373 = vmatpush3.bf16.msra.mxu1 %v1522_v6  ;;  %v1536_v20 = vld [vmem:[#allocation6 + $0x8] sm:$0xff]   ;;  %v344_v25 = vld [vmem:[%s1962_s21 + $0x8] sm:$0xf]  ;;  %v1539_v26 = vld [vmem:[#allocation6] sm:$0xff]   ;;  %s1689_s9 = sshll.u32 %s1768_s28, 4  ;;  %s1690_s9 = int_to_ptr.vmem [resolvable:$false] %s1689_s9 }
  0x6e   : > { %1303 = vmatprep.subr.bf16.mxu0 %v1523_v7  ;;  %1374 = vmatprep.subr.bf16.mxu1 %v1765_v0  ;;  %v1537_v21 = vld [vmem:[#allocation6 + $0x88] sm:$0xff]   ;;  %v1223_v28 = vcombine.low %v344_v25, %v344_v25  ;;  %v1540_v29 = vld [vmem:[#allocation6 + $0x80] sm:$0xff]   ;;  %v1544_v37 = vld [vmem:[#allocation8 + $0xb8] sm:$0xff]   ;;  %p1687_p12 = pnand %p1686_p7, %p2108_p1  ;;  %s1691_s23 = scalar_lea.vmem %s1690_s9, 512 }
  0x6f   : > { %v342_v23 = vld [vmem:[%s1962_s21] sm:$0xf]  ;;  %v343_v24 = vld [vmem:[%s1962_s21 + $0x4] sm:$0xf]  ;;  %v1551_v47 = vld [vmem:[#allocation8 + $0xa0] sm:$0xff]   ;;  %s1095_s21 = scalar_lea.sflag [#allocation5], %s1958_s29  ;;  %p1692_p13 = scmp.lt.s32.totalorder %s2030_s19, %s1690_s9 }
  0x70   : > { %v1222_v27 = vcombine.low %v342_v23, %v343_v24  ;;  %v355_v31 = vrot.slane %v1223_v28, 1  ;;  %v416_v33 = vrot.slane %v1223_v28, 2  ;;  %v1991_v39 = vcombine.low %v343_v24, %v344_v25  ;;  %v1545_v41 = vld [vmem:[#allocation8 + $0xb0] sm:$0xff]   ;;  %v1546_v42 = vld [vmem:[#allocation8 + $0x78] sm:$0xff]   ;;  %v1548_v44 = vld [vmem:[#allocation8 + $0xa8] sm:$0xff]   ;;  %p1688_p9 = pneg %p1687_p12  ;;  %p1693_p0 = scmp.lt.s32.totalorder %s1691_s23, %s1685_s30 }
  0x71   : > { %1304 = vmatpush3.bf16.msra.mxu0 %v1524_v8  ;;  %1375 = vmatpush3.bf16.msra.mxu1 %v1525_v9  ;;  %v1547_v43 = vld [vmem:[#allocation8 + $0x38] sm:$0xff]   ;;  %v1549_v45 = vld [vmem:[#allocation8 + $0x70] sm:$0xff]   ;;  %v1552_v48 = vld [vmem:[#allocation8 + $0x68] sm:$0xff]  }
  0x72   : > { %1305 = vmatprep.subr.bf16.mxu0 %v1526_v10  ;;  %1376 = vmatprep.subr.bf16.mxu1 %v1765_v0  ;;  %v354_v30 = vrot.slane %v1222_v27, 1  ;;  %v415_v32 = vrot.slane %v1222_v27, 2  ;;  %v419_v35 = vrot.slane %v355_v31, 2  ;;  %v1550_v46 = vld [vmem:[#allocation8 + $0x30] sm:$0xff]   ;;  %v1553_v49 = vld [vmem:[#allocation8 + $0x28] sm:$0xff]   ;;  %v1554_v50 = vld [vmem:[#allocation8 + $0x98] sm:$0xff]   ;;  %p1694_p2 = por %p1693_p0, %p1692_p13 }
  0x73   : > { %v1555_v51 = vld [vmem:[#allocation8 + $0x60] sm:$0xff]   ;;  %v1557_v54 = vld [vmem:[#allocation8 + $0x90] sm:$0xff]   ;;  %v1558_v55 = vld [vmem:[#allocation8 + $0x58] sm:$0xff]  }
  0x74   : > { %v356_v34 = vsel %vm353_vm1, %v354_v30, %v355_v31  ;;  %v417_v38 = vsel %vm414_vm2, %v415_v32, %v416_v33  ;;  %v1556_v52 = vld [vmem:[#allocation8 + $0x20] sm:$0xff]   ;;  %v1559_v56 = vld [vmem:[#allocation8 + $0x18] sm:$0xff]   ;;  %v1560_v57 = vld [vmem:[#allocation8 + $0x88] sm:$0xff]   ;;  %p1695_p10 = pnand %p1694_p2, %p1688_p9 }
  0x75   : > { %1306 = vmatpush3.bf16.msra.mxu0 %v1527_v11  ;;  %1377 = vmatpush3.bf16.msra.mxu1 %v1528_v12  ;;  %v418_v36 = vrot.slane %v356_v34, 2  ;;  %v1561_v58 = vld [vmem:[#allocation8 + $0x50] sm:$0xff]   ;;  %v1564_v60 = vld [vmem:[#allocation8 + $0x48] sm:$0xff]   ;;  %v1563_v61 = vld [vmem:[#allocation8 + $0x80] sm:$0xff]  }
  0x76   : > { %1307 = vmatprep.subr.bf16.mxu0 %v1529_v13  ;;  %1378 = vmatprep.subr.bf16.mxu1 %v1765_v0  ;;  %v1562_v59 = vld [vmem:[#allocation8 + $0x10] sm:$0xff]   ;;  %v1565_v62 = vld [vmem:[#allocation8 + $0x8] sm:$0xff]   ;;  %v1569_v63 = vld [vmem:[#allocation8 + $0x40] sm:$0xff]  }
  0x77   : > { %v420_v40 = vsel %vm414_vm2, %v418_v36, %v419_v35  ;;  %v1570_v1 = vld [vmem:[#allocation8] sm:$0xff]   ;;  %v1225_v4 = vld [vmem:[%s2080_s2] ss:$0 sm:$0xff] }
  0x78   : > { %602 = vmatprep.mubr.bf16.mxu0 %v420_v40  ;;  %v1571_v34 = vld [vmem:[#allocation9 + $0x38] sm:$0xff]   ;;  %v1574_v40 = vld [vmem:[#allocation9 + $0x20] sm:$0xff]  }
  0x79   : > { %1308 = vmatpush3.bf16.msra.mxu0 %v1530_v14  ;;  %1379 = vmatpush3.bf16.msra.mxu1 %v1531_v15  ;;  %v1256_v53 = vld [vmem:[%s2082_s4] ss:$0 sm:$0xff] }
  0x7a   : > { %1309 = vmatprep.subr.bf16.mxu0 %v1532_v16  ;;  %1380 = vmatprep.subr.bf16.mxu1 %v1765_v0 }
  0x7d   : > { %1310 = vmatpush3.bf16.msra.mxu0 %v1533_v17  ;;  %1381 = vmatpush3.bf16.msra.mxu1 %v1534_v18 }
  0x7e   : > { %1311 = vmatprep.subr.bf16.mxu0 %v1535_v19  ;;  %1382 = vmatprep.subr.bf16.mxu1 %v1765_v0 }
  0x81   : > { %1312 = vmatpush3.bf16.msra.mxu0 %v1536_v20  ;;  %1383 = vmatpush3.bf16.msra.mxu1 %v1537_v21  ;;  %v665_v21 = vld [vmem:[#allocation2] sm:$0xf] }
  0x82   : > { %1313 = vmatprep.subr.bf16.mxu0 %v1538_v22  ;;  %1384 = vmatprep.subr.bf16.mxu1 %v1765_v0 }
  0x85   : > { %1314 = vmatpush3.bf16.msra.mxu0 %v1539_v26  ;;  %1385 = vmatpush3.bf16.msra.mxu1 %v1540_v29 }
  0x86   : > { %1390 = vmatprep.subr.bf16.mxu1 %v1765_v0  ;;  %1330 = vmatprep.subr.bf16.mxu0 %v1546_v42  ;;  %v1576_v42 = vld [vmem:[#allocation9 + $0x10] sm:$0xff]  }
  0x88   : > { %603 = vmatmul.mubr.bf16.vlgmr.msra.gmra.mxu0 %v417_v38  ;;  %1387 = vmatmul.mubr.bf16.vlgmr.msra.gmra.mxu1 %v1991_v39  ;;  %v1573_v38 = vld [vmem:[#allocation9 + $0x28] sm:$0xff]  }
  0x89   : > { %1391 = vmatpush3.bf16.msra.mxu1 %v1544_v37  ;;  %1406 = vmatprep.mubr.msk.bf16.mxu1 %vm1766_vm0, %v1765_v0  ;;  %v1572_v37 = vld [vmem:[#allocation9 + $0x30] sm:$0xff]  }
  0x8a   : > { %1392 = vmatprep.subr.bf16.mxu1 %v1765_v0  ;;  %1331 = vmatpush3.bf16.msra.mxu0 %v1547_v43  ;;  %v1577_v43 = vld [vmem:[#allocation9 + $0x8] sm:$0xff]  }
  0x8b   : > { %1332 = vmatprep.subr.bf16.mxu0 %v1549_v45 }
  0x8d   : > { %1393 = vmatpush3.bf16.msra.mxu1 %v1545_v41  ;;  %v1575_v41 = vld [vmem:[#allocation9 + $0x18] sm:$0xff]  }
  0x8e   : > { %1394 = vmatprep.subr.bf16.mxu1 %v1765_v0  ;;  %1333 = vmatpush3.bf16.msra.mxu0 %v1550_v46 }
  0x8f   : > { %1334 = vmatprep.subr.bf16.mxu0 %v1552_v48 }
  0x91   : > { %1395 = vmatpush3.bf16.msra.mxu1 %v1548_v44  ;;  %v1578_v44 = vld [vmem:[#allocation9] sm:$0xff]  }
  0x92   : > { %1396 = vmatprep.subr.bf16.mxu1 %v1765_v0  ;;  %1335 = vmatpush3.bf16.msra.mxu0 %v1553_v49 }
  0x93   : > { %1336 = vmatprep.subr.bf16.mxu0 %v1555_v51 }
  0x95   : > { %1397 = vmatpush3.bf16.msra.mxu1 %v1551_v47 }
  0x96   : > { %1398 = vmatprep.subr.bf16.mxu1 %v1765_v0  ;;  %1337 = vmatpush3.bf16.msra.mxu0 %v1556_v52 }
  0x97   : > { %1338 = vmatprep.subr.bf16.mxu0 %v1558_v55 }
  0x99   : > { %1399 = vmatpush3.bf16.msra.mxu1 %v1554_v50 }
  0x9a   : > { %1400 = vmatprep.subr.bf16.mxu1 %v1765_v0  ;;  %1339 = vmatpush3.bf16.msra.mxu0 %v1559_v56 }
  0x9b   : > { %1340 = vmatprep.subr.bf16.mxu0 %v1561_v58 }
  0x9d   : > { %1401 = vmatpush3.bf16.msra.mxu1 %v1557_v54 }
  0x9e   : > { %1402 = vmatprep.subr.bf16.mxu1 %v1765_v0  ;;  %1341 = vmatpush3.bf16.msra.mxu0 %v1562_v59 }
  0x9f   : > { %1342 = vmatprep.subr.bf16.mxu0 %v1564_v60 }
  0xa1   : > { %1403 = vmatpush3.bf16.msra.mxu1 %v1560_v57 }
  0xa2   : > { %1404 = vmatprep.subr.bf16.mxu1 %v1765_v0  ;;  %1343 = vmatpush3.bf16.msra.mxu0 %v1565_v62 }
  0xa3   : > { %1344 = vmatprep.subr.bf16.mxu0 %v1569_v63 }
  0xa5   : > { %1405 = vmatpush3.bf16.msra.mxu1 %v1563_v61 }
  0xa6   : > { %1345 = vmatpush3.bf16.msra.mxu0 %v1570_v1 }
  0xa7   : > { %1410 = vmatprep.subr.bf16.mxu0 %v1765_v0 }
 0x148   : > { %v1315_v2 = vpop.f32.mrf.mxu0  ;;  %v645_v3 = vpop.f32.mrf.mxu1 }
 0x14a   : > { %v1316_v5 = vpop.f32.mrf.mxu0  ;;  %v1388_v7 = vpop.f32.mrf.mxu1 }
 0x14b   : > { %v1317_v6 = vadd.f32 %v1316_v5, %v1315_v2 }
 0x14c   : > { %v1318_v8 = vpop.f32.mrf.mxu0  ;;  %v648_v10 = vpop.f32.mrf.mxu1 }
 0x14d   : > { %v605_v9 = vadd.f32 %v1317_v6, %v1225_v4 }
 0x14e   : > { %v1319_v11 = vpop.f32.mrf.mxu0  ;;  %v1389_v14 = vpop.f32.mrf.mxu1 }
 0x14f   : > { %v646_v12 = vadd.f32 %v645_v3, %v605_v9  ;;  %v1320_v13 = vadd.f32 %v1319_v11, %v1318_v8 }
 0x151   : > { %v652_v15 = vmax.f32 %v646_v12, 0.0  ;;  %v608_v16 = vadd.f32 %v1320_v13, %v1225_v4 }
 0x153   : > { %v1296_v17 = vpack.c.bf16 %v652_v15, %v652_v15  ;;  %v649_v18 = vadd.f32 %v648_v10, %v608_v16 }
 0x155   : > { %663 = vst [vmem:[#allocation2 + $0x4] sm:$0xf] %v1296_v17  ;;  %v653_v19 = vmax.f32 %v649_v18, 0.0 }
 0x157   : > { %v1297_v20 = vpack.c.bf16 %v653_v19, %v653_v19 }
 0x159   : > { %664 = vst [vmem:[#allocation2 + $0x8] sm:$0xf] %v1297_v20 }
 0x15c   : > { %v666_v22 = vld [vmem:[#allocation2 + $0x4] sm:$0xf] }
 0x15d   : > { %v1253_v23 = vcombine.low %v665_v21, %v666_v22 }
 0x15f   : > { %v676_v27 = vrot.slane %v1253_v23, 1  ;;  %v736_v33 = vrot.slane %v1253_v23, 2 }
 0x160   : > { %v667_v24 = vld [vmem:[#allocation2 + $0x8] sm:$0xf] }
 0x161   : > { %v1254_v25 = vcombine.low %v667_v24, %v667_v24  ;;  %v1255_v26 = vcombine.low %v666_v22, %v667_v24 }
 0x163   : > { %1407 = vmatmul.mubr.bf16.vlgmr.msra.gmra.mxu1 %v1255_v26  ;;  %v677_v28 = vrot.slane %v1254_v25, 1  ;;  %v737_v31 = vrot.slane %v1254_v25, 2 }
 0x165   : > { %v678_v29 = vsel %vm353_vm1, %v676_v27, %v677_v28  ;;  %v740_v30 = vrot.slane %v677_v28, 2  ;;  %v738_v36 = vsel %vm414_vm2, %v736_v33, %v737_v31 }
 0x166   : > { %v739_v32 = vrot.slane %v678_v29, 2 }
 0x168   : > { %v741_v35 = vsel %vm414_vm2, %v739_v32, %v740_v30 }
 0x169   : > { %923 = vmatprep.mubr.bf16.mxu0 %v741_v35 }
 0x16a   : > { %924 = vmatmul.mubr.bf16.vlgmr.msra.gmra.mxu0 %v738_v36 }
 0x16b   : > { %1411 = vmatpush3.bf16.msra.mxu0 %v1571_v34  ;;  %1426 = vmatprep.mubr.msk.bf16.mxu0 %vm1766_vm0, %v1765_v0 }
 0x16c   : > { %1412 = vmatprep.subr.bf16.mxu0 %v1765_v0 }
 0x16f   : > { %1413 = vmatpush3.bf16.msra.mxu0 %v1572_v37 }
 0x170   : > { %1414 = vmatprep.subr.bf16.mxu0 %v1765_v0 }
 0x173   : > { %1415 = vmatpush3.bf16.msra.mxu0 %v1573_v38 }
 0x174   : > { %1416 = vmatprep.subr.bf16.mxu0 %v1765_v0 }
 0x177   : > { %1417 = vmatpush3.bf16.msra.mxu0 %v1574_v40 }
 0x178   : > { %1418 = vmatprep.subr.bf16.mxu0 %v1765_v0 }
 0x17b   : > { %1419 = vmatpush3.bf16.msra.mxu0 %v1575_v41 }
 0x17c   : > { %1420 = vmatprep.subr.bf16.mxu0 %v1765_v0 }
 0x17f   : > { %1421 = vmatpush3.bf16.msra.mxu0 %v1576_v42 }
 0x180   : > { %1422 = vmatprep.subr.bf16.mxu0 %v1765_v0 }
 0x183   : > { %1423 = vmatpush3.bf16.msra.mxu0 %v1577_v43 }
 0x184   : > { %1424 = vmatprep.subr.bf16.mxu0 %v1765_v0 }
 0x187   : > { %1425 = vmatpush3.bf16.msra.mxu0 %v1578_v44 }
 0x18a   : > { %1427 = vmatmul.mubr.bf16.vlgmr.msra.gmra.mxu0 %v1991_v39  ;;  %v1282_v39 = vld [vmem:[%s2084_s6] ss:$0 sm:$0xff] }
 0x223   : > { %v966_v45 = vpop.f32.mrf.mxu1 }
 0x225   : > { %v1408_v46 = vpop.f32.mrf.mxu1 }
 0x227   : > { %v969_v47 = vpop.f32.mrf.mxu1 }
 0x229   : > { %v1409_v48 = vpop.f32.mrf.mxu1 }
 0x22a   : > { %v1346_v49 = vpop.f32.mrf.mxu0 }
 0x22c   : > { %v1347_v50 = vpop.f32.mrf.mxu0 }
 0x22d   : > { %v1348_v52 = vadd.f32 %v1347_v50, %v1346_v49 }
 0x22e   : > { %v1349_v51 = vpop.f32.mrf.mxu0 }
 0x22f   : > { %v926_v55 = vadd.f32 %v1348_v52, %v1256_v53 }
 0x230   : > { %v1350_v54 = vpop.f32.mrf.mxu0 }
 0x231   : > { %v1351_v56 = vadd.f32 %v1350_v54, %v1349_v51  ;;  %v967_v0 = vadd.f32 %v966_v45, %v926_v55 }
 0x233   : > { %v929_v57 = vadd.f32 %v1351_v56, %v1256_v53  ;;  %v973_v60 = vmax.f32 %v967_v0, 0.0 }
 0x235   : > { %v970_v59 = vadd.f32 %v969_v47, %v929_v57 }
 0x237   : > { %v974_v3 = vmax.f32 %v970_v59, 0.0 }
 0x24a   : > { %v1081_v58 = vpop.f32.mrf.mxu0 }
 0x24b   : > { %v1082_v61 = vadd.f32 %v1282_v39, %v1081_v58 }
 0x24c   : > { %v1428_v62 = vpop.f32.mrf.mxu0 }
 0x24d   : > { %v1088_v63 = vadd.f32 %v1082_v61, %v973_v60 }
 0x24e   : > { %v1084_v1 = vpop.f32.mrf.mxu0 }
 0x24f   : > { %v1090_v2 = vmax.f32 %v1088_v63, 0.0  ;;  %v1085_v4 = vadd.f32 %v1282_v39, %v1084_v1 }
 0x250   : > { %v1429_v5 = vpop.f32.mrf.mxu0 }
 0x251   : > { %1092 = vst [vmem:[%s340_s13] sm:$0xff] %v1090_v2  ;;  %v1089_v6 = vadd.f32 %v1085_v4, %v974_v3 }
 0x253   : > { %v1091_v7 = vmax.f32 %v1089_v6, 0.0 }
 0x255   : > { %1093 = vst [vmem:[%s340_s13 + $0x8] sm:$0xff] %v1091_v7 }
 0x256   : > { %1698 = shalt.err (!%p1695_p10)
}
 0x257   : > { %s1699_s11 = scalar_lea.hbm %s2035_s10, 256  ;;  %s1703_s16 = scalar_lea.hbm %s2085_s7, 512 }
 0x258   : > { %p1700_p6 = scmp.ne.s32.totalorder %s2035_s10, %s1699_s11  ;;  %p1704_p3 = scmp.lt.s32.totalorder %s2035_s10, %s2085_s7 }
 0x259   : > { %p1705_p11 = scmp.lt.s32.totalorder %s1703_s16, %s1699_s11 }
 0x25a   : > { %p1701_p4 = pnand %p1700_p6, %p2108_p1 }
 0x25b   : > { %p1706_p5 = por %p1705_p11, %p1704_p3 }
 0x25c   : > { %p1702_p8 = pneg %p1701_p4 }
 0x25e   : > { %p1707_p7 = pnand %p1706_p5, %p1702_p8 }
 0x260   : > { %1710 = shalt.err (!%p1707_p7)
}
 0x261   : > { %s1769_s18 = smov 128   ;;  %s1770_s22 = smov 8  }
 0x262   : > { %1447 = dma.vmem_to_hbm [thread:$0]  (%p2108_p1), %s2030_s19, 256, %s2035_s10, %s1095_s21, %s1769_s18, %s1769_s18, %s1770_s22  }
 0x263 PF: > { %s1123_s30 = sand.u32 1, %s1745_s24   ;;  %p2109_p12 = scmp.ne.s32.totalorder %s2094_s8, 0 }
 0x264   : > { %p2110_p9 = scmp.ge.s32.totalorder %s1757_s27, 2  ;;  %s1124_s28 = scalar_lea.sflag [#allocation5], %s1123_s30 }
 0x266   : > { %p1464_p13 = pnand %p2110_p9, %p2109_p12 }
 0x268   : > { %p1465_p0 = pneg %p1464_p13 }
 0x26a   : > { %1740 = dma.done.wait (%p1465_p0), %s1124_s28, 256  }
 0x26b   : > { %1742 = vsyncadd (%p1465_p0), %s1124_s28, 4294967040  ;;  %p22_p2 = scmp.ge.s32.totalorder %s1900_s14, 4   ;;  %s2111_s24 = smov %s1749_s25 }
 0x26c   : > { %s2112_s25 = smov %s1753_s26  ;;  %s2113_s26 = smov %s1910_s17 }
 0x26d   : > { %s2114_s27 = smov %s1900_s14  ;;  %24 = sbr.rel (!%p22_p2) target bundleno = 9 (0x9), region = 105 }
 0x272   :  { %1129 = vsyncpa [#allocation4], 1 }
 0x273   :  { %1131 = vsyncpa [#allocation4 + $0x1], 1 }
 0x274   :  { %1132 = vsyncpa [#allocation7], 1 }
 0x275   :  { %1133 = vsyncpa [#allocation10], 1 }
 0x276   :  { %1134 = vsyncpa [#allocation5], 1 }
 0x277   :  { %1136 = vsyncpa [#allocation5 + $0x1], 1 }

</bundles_post_ra>
